<compile_context>
chip_gen: v7x
topology: tpu7x:2x2x1
jax: 0.10.0
libtpu: 0.0.40
codegen_flags: <defaults>
</compile_context>

<pallas_src>
import functools

import jax
import jax.numpy as jnp
from jax.experimental import pallas as pl
from jax.experimental.pallas import tpu as pltpu


def _mollifier_kernel(r_ref, o_ref, *, r_min, inv_range, eps):
    # r_min / inv_range / eps are Python-float compile-time constants.
    r = r_ref[...].astype(jnp.float32)
    u = (r - r_min) * inv_range
    # Clamp so the exp argument is always well-behaved; the exp goes to the
    # (otherwise idle) EUP.  Two cheap VPU selects pin the exact 1 / 0 values
    # outside the [r_min, r_max] window, matching the module's piecewise def.
    uc = jnp.clip(u, 0.0, 1.0)
    val = jnp.exp(1.0 - 1.0 / (1.0 - uc * uc + eps))
    out = jnp.where(u < 0.0, 1.0, val)
    out = jnp.where(u > 1.0, 0.0, out)
    o_ref[...] = out.astype(o_ref.dtype)


def mollifier_cutoff(r, r_max: float, r_min: float = 0.0, eps: float = 1e-7):
    assert r_min < r_max
    inv_range = 1.0 / float(r_max - r_min)

    orig_shape = r.shape
    flat = r.reshape(-1)
    n = flat.shape[0]

    # Lane-dense columns: a large multiple of 128 for big inputs so stores are
    # unmasked; fall back to 128 lanes for tiny inputs to limit padding.
    cols = 1024 if n >= 8 * 1024 else 128
    rows = pl.cdiv(n, cols)
    # Block rows: multiple of 8 (sublane), capped at 512 -> <= 2 MiB f32 block.
    block_rows = min(512, pl.cdiv(rows, 8) * 8)
    pad_rows = pl.cdiv(rows, block_rows) * block_rows
    pad_total = pad_rows * cols

    if pad_total != n:
        # Single cheap pad (no zeros+scatter round trip).
        flat = jnp.pad(flat, (0, pad_total - n))
    x2d = flat.reshape(pad_rows, cols)

    kernel = functools.partial(
        _mollifier_kernel,
        r_min=float(r_min),
        inv_range=inv_range,
        eps=float(eps),
    )

    out2d = pl.pallas_call(
        kernel,
        out_shape=jax.ShapeDtypeStruct((pad_rows, cols), r.dtype),
        grid=(pad_rows // block_rows,),
        in_specs=[pl.BlockSpec((block_rows, cols), lambda i: (i, 0))],
        out_specs=pl.BlockSpec((block_rows, cols), lambda i: (i, 0)),
        compiler_params=pltpu.CompilerParams(
            dimension_semantics=("parallel",),
        ),
    )(x2d)

    out_flat = out2d.reshape(-1)
    if pad_total != n:
        out_flat = out_flat[:n]
    return out_flat.reshape(orig_shape)


def mollifier_cutoff_ref(r, r_max, r_min=0.0, eps=1e-7):
    u = (r.astype(jnp.float32) - r_min) / (r_max - r_min)
    uc = jnp.clip(u, 0.0, 1.0)
    val = jnp.exp(1.0 - 1.0 / (1.0 - uc * uc + eps))
    out = jnp.where(u < 0.0, 1.0, jnp.where(u > 1.0, 0.0, val))
    return out.astype(r.dtype)


if __name__ == "__main__":
    key = jax.random.PRNGKey(0)
    r_max, r_min = 5.0, 1.0

    # Small distance tensor (e.g. per-edge distances).
    k1, k2 = jax.random.split(key)
    r_small = jax.random.uniform(k1, (2, 4, 16), dtype=jnp.float32,
                                 minval=0.0, maxval=6.0)
    out_small = jax.block_until_ready(mollifier_cutoff(r_small, r_max, r_min))
    ref_small = mollifier_cutoff_ref(r_small, r_max, r_min)
    assert out_small.shape == r_small.shape and out_small.dtype == r_small.dtype
    assert jnp.allclose(out_small, ref_small, atol=1e-5, rtol=1e-5)

    # Larger, non-tile-aligned tensor to exercise the wide-block + padding path.
    r_big = jax.random.uniform(k2, (33, 700), dtype=jnp.float32,
                               minval=0.0, maxval=6.0)
    out_big = jax.block_until_ready(mollifier_cutoff(r_big, r_max, r_min))
    ref_big = mollifier_cutoff_ref(r_big, r_max, r_min)
    assert out_big.shape == r_big.shape and out_big.dtype == r_big.dtype
    assert jnp.allclose(out_big, ref_big, atol=1e-5, rtol=1e-5)

    print("KERNEL_OK")
</pallas_src>

<mosaic_0001>
module attributes {stable_mosaic.version = 11 : i64} {
  func.func @_mollifier_kernel(%arg0: i32, %arg1: memref<8x128xf32, #tpu.memory_space<vmem>>, %arg2: memref<8x128xf32, #tpu.memory_space<vmem>>) attributes {dimension_semantics = [#tpu.dimension_semantics<parallel>], iteration_bounds = array<i64: 1>, scalar_prefetch = 0 : i64, scratch_operands = 0 : i64, tpu.core_type = #tpu.core_type<tc>, window_params = [{transform_indices = @transform_0, window_bounds = array<i64: 8, 128>}, {transform_indices = @transform_1, window_bounds = array<i64: 8, 128>}]} {
    %c0 = arith.constant 0 : index
    %c0_0 = arith.constant 0 : index
    %0 = vector.load %arg1[%c0, %c0_0] : memref<8x128xf32, #tpu.memory_space<vmem>>, vector<8x128xf32>
    %cst = arith.constant 1.000000e+00 : f32
    %1 = vector.broadcast %cst : f32 to vector<8x128xf32>
    %2 = arith.subf %0, %1 : vector<8x128xf32>
    %cst_1 = arith.constant 2.500000e-01 : f32
    %3 = vector.broadcast %cst_1 : f32 to vector<8x128xf32>
    %4 = arith.mulf %2, %3 : vector<8x128xf32>
    %cst_2 = arith.constant 0.000000e+00 : f32
    %cst_3 = arith.constant 1.000000e+00 : f32
    %5 = vector.broadcast %cst_2 : f32 to vector<8x128xf32>
    %6 = arith.maximumf %5, %4 : vector<8x128xf32>
    %7 = vector.broadcast %cst_3 : f32 to vector<8x128xf32>
    %8 = arith.minimumf %7, %6 : vector<8x128xf32>
    %9 = arith.mulf %8, %8 : vector<8x128xf32>
    %cst_4 = arith.constant 1.000000e+00 : f32
    %10 = vector.broadcast %cst_4 : f32 to vector<8x128xf32>
    %11 = arith.subf %10, %9 : vector<8x128xf32>
    %cst_5 = arith.constant 1.000000e-07 : f32
    %12 = vector.broadcast %cst_5 : f32 to vector<8x128xf32>
    %13 = arith.addf %11, %12 : vector<8x128xf32>
    %cst_6 = arith.constant 1.000000e+00 : f32
    %14 = vector.broadcast %cst_6 : f32 to vector<8x128xf32>
    %15 = arith.divf %14, %13 : vector<8x128xf32>
    %cst_7 = arith.constant 1.000000e+00 : f32
    %16 = vector.broadcast %cst_7 : f32 to vector<8x128xf32>
    %17 = arith.subf %16, %15 : vector<8x128xf32>
    %18 = math.exp %17 : vector<8x128xf32>
    %cst_8 = arith.constant 0.000000e+00 : f32
    %19 = vector.broadcast %cst_8 : f32 to vector<8x128xf32>
    %20 = arith.cmpf olt, %4, %19 : vector<8x128xf32>
    %cst_9 = arith.constant 1.000000e+00 : f32
    %21 = vector.broadcast %cst_9 : f32 to vector<8x128xf32>
    %22 = arith.select %20, %21, %18 : vector<8x128xi1>, vector<8x128xf32>
    %cst_10 = arith.constant 1.000000e+00 : f32
    %23 = vector.broadcast %cst_10 : f32 to vector<8x128xf32>
    %24 = arith.cmpf ogt, %4, %23 : vector<8x128xf32>
    %cst_11 = arith.constant 0.000000e+00 : f32
    %25 = vector.broadcast %cst_11 : f32 to vector<8x128xf32>
    %26 = arith.select %24, %25, %22 : vector<8x128xi1>, vector<8x128xf32>
    %c0_12 = arith.constant 0 : index
    %c0_13 = arith.constant 0 : index
    %27 = vector.load %arg2[%c0_12, %c0_13] : memref<8x128xf32, #tpu.memory_space<vmem>>, vector<8x128xf32>
    tpu.vector_store %arg2[%c0_12, %c0_13], %26 {strides = array<i32>} : memref<8x128xf32, #tpu.memory_space<vmem>>, vector<8x128xf32>,
    return
  }
  func.func @transform_0(%arg0: i32) -> (i32, i32) {
    %c0_i32 = arith.constant 0 : i32
    %c0_i32_0 = arith.constant 0 : i32
    return %arg0, %c0_i32 : i32, i32
  }
  func.func @transform_1(%arg0: i32) -> (i32, i32) {
    %c0_i32 = arith.constant 0 : i32
    %c0_i32_0 = arith.constant 0 : i32
    return %arg0, %c0_i32 : i32, i32
  }
}

</mosaic_0001>

<bundles_post_ra>
// kernel: tpu_custom_call.1
= control target key start
LH: loop header
LB: loop body
LE: loop exit
PB: predicated region body
PF: predicated region fallthrough
CT: control target
= control target key end

     0   :  { %6 = vsyncpa [#allocation3], 0  ;;  %s145_s0 = inlined_call_operand.hbm [shape: f32[8,128], index: 0, kind: input, shape index: {}]   ;;  %s146_s1 = inlined_call_operand.hbm [shape: f32[8,128], index: 1, kind: output, shape index: {}]  }
   0x1   :  { %7 = vsyncpa [#allocation4], 0  ;;  %s109_s6 = smov [#allocation2]   ;;  %s61_s10 = scalar_lea.hbm %s145_s0, 128 }
   0x2   :  { %s14_s7 = sshll.u32 %s109_s6, 4  ;;  %p62_p0 = scmp.ne.s32.totalorder %s145_s0, %s61_s10  ;;  %s15_s7 = int_to_ptr.vmem [resolvable:$true] %s14_s7 }
   0x3   :  { %p65_p1 = scmp.lt.u32.totalorder %s61_s10, %s145_s0 }
   0x5   :  { %p67_p2 = pnand %p65_p1, %p62_p0 }
   0x7   :  { %70 = shalt.err (!%p67_p2)
}
   0x8   :  { %s71_s15 = scalar_lea.vmem %s15_s7, 128  ;;  %p76_p4 = scmp.lt.s32.totalorder %s15_s7, %s15_s7 }
   0x9   :  { %p72_p3 = scmp.ne.s32.totalorder %s15_s7, %s71_s15  ;;  %p77_p5 = scmp.lt.s32.totalorder %s71_s15, %s71_s15 }
   0xb   :  { %p78_p6 = por %p77_p5, %p76_p4 }
   0xd   :  { %p79_p7 = pnand %p78_p6, %p72_p3 }
   0xf   :  { %82 = shalt.err (!%p79_p7)
}
  0x10   :  { %17 = dma.hbm_to_vmem [thread:$0]  %s145_s0, 128, %s15_s7, [#allocation3]  }
  0x11   :  { %105 = dma.done.wait [#allocation3], 128  }
  0x12   :  { %106 = vsyncadd [#allocation3], 4294967168  ;;  %v21_v0 = vld [vmem:[#allocation2] sm:$0xff]  ;;  %s110_s18 = smov [#allocation5]  }
  0x13   :  { %v54_v1 = vadd.f32 -1.0, %v21_v0  ;;  %s45_s19 = sshll.u32 %s110_s18, 4  ;;  %s46_s19 = int_to_ptr.vmem [resolvable:$true] %s45_s19 }
  0x14   :  { %s83_s0 = scalar_lea.vmem %s46_s19, 128  ;;  %p88_p9 = scmp.lt.s32.totalorder %s46_s19, %s46_s19 }
  0x15   :  { %v23_v2 = vmul.f32 0.25, %v54_v1  ;;  %p84_p8 = scmp.ne.s32.totalorder %s46_s19, %s83_s0  ;;  %p89_p10 = scmp.lt.s32.totalorder %s83_s0, %s83_s0 }
  0x17   :  { %v24_v3 = vmax.f32 %v23_v2, 0.0  ;;  %vm34_vm0 = vcmp.lt.f32.partialorder %v23_v2, 0.0  ;;  %vm36_vm1 = vcmp.gt.f32.partialorder %v23_v2, 1.0  ;;  %p90_p11 = por %p89_p10, %p88_p9 }
  0x19   :  { %v25_v4 = vmin.f32 %v24_v3, 1.0  ;;  %p91_p12 = pnand %p90_p11, %p84_p8 }
  0x1b   :  { %v26_v5 = vmul.f32 %v25_v4, %v25_v4 }
  0x1d   :  { %v27_v6 = vsub.f32 1.0, %v26_v5 }
  0x1f   :  { %v28_v7 = vadd.f32 1e-07, %v27_v6 }
  0x21   :  { %57 = vrcp.f32 %v28_v7 }
  0x2b   :  { %v58_v8 = vpop.eup %57 }
  0x2c   :  { %v31_v9 = vsub.f32 1.0, %v58_v8 }
  0x2e   :  { %v32_v10 = vmul.f32 1.442695, %v31_v9 }
  0x30   :  { %59 = vpow2.f32 %v32_v10 }
  0x3a   :  { %v60_v11 = vpop.eup %59 }
  0x3b   :  { %v35_v12 = vsel %vm34_vm0, 1.0, %v60_v11 }
  0x3c   :  { %v37_v13 = vsel %vm36_vm1, 0.0, %v35_v12 }
  0x3d   :  { %38 = vst [vmem:[#allocation5] sm:$0xff] %v37_v13 }
  0x3e   :  { %94 = shalt.err (!%p91_p12)
}
  0x3f   :  { %s95_s22 = scalar_lea.hbm %s146_s1, 128 }
  0x40   :  { %p96_p13 = scmp.ne.s32.totalorder %s146_s1, %s95_s22  ;;  %p99_p0 = scmp.lt.u32.totalorder %s95_s22, %s146_s1 }
  0x42   :  { %p101_p1 = pnand %p99_p0, %p96_p13 }
  0x44   :  { %104 = shalt.err (!%p101_p1)
}
  0x45   :  { %48 = dma.vmem_to_hbm [thread:$0]  %s46_s19, 128, %s146_s1, [#allocation4]  }
  0x46   :  { %107 = dma.done.wait [#allocation4], 128  }
  0x47   :  { %108 = vsyncadd [#allocation4], 4294967168 }
  0x48   :  { %52 = vsyncpa [#allocation3], 1 }
  0x49   :  { %53 = vsyncpa [#allocation4], 1 }

</bundles_post_ra>
